<compile_context>
chip_gen: v6e
topology: v6e:2x2x1
jax: 0.10.0
libtpu: 0.0.40
codegen_flags: <defaults>
</compile_context>

<pallas_src>
import jax
import jax.numpy as jnp
from jax.experimental import pallas as pl
from jax.experimental.pallas import tpu as pltpu

LANE = 128      # f32 lane width (last dim padding target)
SUBLANE = 8     # f32 sublane rows
TB = 128        # batch tile (multiple of SUBLANE)


def _round_up(x, m):
    return (x + m - 1) // m * m


def qnet_kernel(x_ref,
                w1_ref, b1_ref,
                w2_ref, b2_ref,
                w3_ref, b3_ref,
                w4_ref, b4_ref,
                o_ref):
    # fc1 + relu
    h = jnp.dot(x_ref[...], w1_ref[...], preferred_element_type=jnp.float32)
    h = jnp.maximum(h + b1_ref[...], 0.0)
    # fc2 + relu
    h = jnp.dot(h, w2_ref[...], preferred_element_type=jnp.float32)
    h = jnp.maximum(h + b2_ref[...], 0.0)
    # fc3 + relu
    h = jnp.dot(h, w3_ref[...], preferred_element_type=jnp.float32)
    h = jnp.maximum(h + b3_ref[...], 0.0)
    # fc4 (no activation)
    h = jnp.dot(h, w4_ref[...], preferred_element_type=jnp.float32)
    o_ref[...] = (h + b4_ref[...]).astype(o_ref.dtype)


def qnet_forward(x, padded_params, out_dim):
    """x: [B, in_dim] float32.  padded_params: dict of lane-padded (w, b)."""
    w1, b1 = padded_params["fc1"]
    w2, b2 = padded_params["fc2"]
    w3, b3 = padded_params["fc3"]
    w4, b4 = padded_params["fc4"]

    batch, in_dim = x.shape
    in_pad = w1.shape[0]
    h_pad = w2.shape[0]
    out_pad = w4.shape[1]

    # Pad batch up to a whole number of sublane-full tiles; pad features with
    # zeros (zero weight rows beyond in_dim make the padding inert).
    b_pad = _round_up(max(batch, TB), TB)
    x_p = jnp.zeros((b_pad, in_pad), x.dtype).at[:batch, :in_dim].set(x)

    grid = (b_pad // TB,)

    def resident(i):            # weights/biases: same block every grid step
        return (0, 0)

    flops = 2 * b_pad * (in_pad * h_pad + 2 * h_pad * h_pad + h_pad * out_pad)
    bytes_accessed = 4 * (
        b_pad * in_pad + b_pad * out_pad                       # activations
        + in_pad * h_pad + 2 * h_pad * h_pad + h_pad * out_pad  # weights
        + 3 * h_pad + out_pad)                                   # biases

    out_p = pl.pallas_call(
        qnet_kernel,
        out_shape=jax.ShapeDtypeStruct((b_pad, out_pad), jnp.float32),
        grid=grid,
        in_specs=[
            pl.BlockSpec((TB, in_pad), lambda i: (i, 0)),   # x tile (pipelined)
            pl.BlockSpec((in_pad, h_pad), resident),        # w1 (VMEM-resident)
            pl.BlockSpec((1, h_pad), resident),             # b1
            pl.BlockSpec((h_pad, h_pad), resident),         # w2
            pl.BlockSpec((1, h_pad), resident),             # b2
            pl.BlockSpec((h_pad, h_pad), resident),         # w3
            pl.BlockSpec((1, h_pad), resident),             # b3
            pl.BlockSpec((h_pad, out_pad), resident),       # w4
            pl.BlockSpec((1, out_pad), resident),           # b4
        ],
        out_specs=pl.BlockSpec((TB, out_pad), lambda i: (i, 0)),
        compiler_params=pltpu.CompilerParams(
            dimension_semantics=("parallel",)),
        cost_estimate=pl.CostEstimate(
            flops=flops, transcendentals=0, bytes_accessed=bytes_accessed),
    )(x_p, w1, b1, w2, b2, w3, b3, w4, b4)

    # Slice padded batch rows and padded output lanes back to logical shape.
    return out_p[:batch, :out_dim]


def init_linear(key, in_features, out_features, in_pad, out_pad):
    """PyTorch-style uniform init; returns (logical, lane-padded) params."""
    kw, kb = jax.random.split(key)
    bound = 1.0 / jnp.sqrt(jnp.float32(in_features))
    w = jax.random.uniform(kw, (in_features, out_features),
                           minval=-bound, maxval=bound, dtype=jnp.float32)
    b = jax.random.uniform(kb, (1, out_features),
                           minval=-bound, maxval=bound, dtype=jnp.float32)
    w_p = jnp.zeros((in_pad, out_pad), jnp.float32).at[
        :in_features, :out_features].set(w)
    b_p = jnp.zeros((1, out_pad), jnp.float32).at[:, :out_features].set(b)
    return (w, b), (w_p, b_p)


def init_qnet_params(key, n_row, n_col, hidden):
    in_dim = n_row * n_col + 1
    out_dim = n_col * 4
    in_pad = _round_up(in_dim, LANE)
    h_pad = _round_up(hidden, LANE)
    out_pad = _round_up(out_dim, LANE)
    k1, k2, k3, k4 = jax.random.split(key, 4)
    (l1, p1) = init_linear(k1, in_dim, hidden, in_pad, h_pad)
    (l2, p2) = init_linear(k2, hidden, hidden, h_pad, h_pad)
    (l3, p3) = init_linear(k3, hidden, hidden, h_pad, h_pad)
    (l4, p4) = init_linear(k4, hidden, out_dim, h_pad, out_pad)
    logical = {"fc1": l1, "fc2": l2, "fc3": l3, "fc4": l4}
    padded = {"fc1": p1, "fc2": p2, "fc3": p3, "fc4": p4}
    return logical, padded


def qnet_reference(x, params):
    w1, b1 = params["fc1"]
    w2, b2 = params["fc2"]
    w3, b3 = params["fc3"]
    w4, b4 = params["fc4"]
    h = jax.nn.relu(x @ w1 + b1)
    h = jax.nn.relu(h @ w2 + b2)
    h = jax.nn.relu(h @ w3 + b3)
    return h @ w4 + b4


if __name__ == "__main__":
    # Small gameboard: 4 rows x 4 cols -> input dim 17, output dim 16, hidden 32.
    N_ROW, N_COL, HIDDEN, BATCH = 4, 4, 32, 2
    OUT_DIM = N_COL * 4

    key = jax.random.PRNGKey(0)
    key_params, key_x = jax.random.split(key)
    logical_params, padded_params = init_qnet_params(key_params, N_ROW, N_COL, HIDDEN)
    x = jax.random.normal(key_x, (BATCH, N_ROW * N_COL + 1), dtype=jnp.float32)

    out = qnet_forward(x, padded_params, OUT_DIM)
    out = jax.block_until_ready(out)

    ref = qnet_reference(x, logical_params)
    assert out.shape == (BATCH, OUT_DIM)
    assert jnp.allclose(out, ref, atol=1e-4, rtol=1e-4), "mismatch vs JAX reference"

    print("KERNEL_OK")
</pallas_src>

<mosaic_0001>
module attributes {stable_mosaic.version = 11 : i64} {
  func.func @qnet_kernel(%arg0: i32, %arg1: memref<128x128xf32, #tpu.memory_space<vmem>>, %arg2: memref<128x128xf32, #tpu.memory_space<vmem>>, %arg3: memref<1x128xf32, #tpu.memory_space<vmem>>, %arg4: memref<128x128xf32, #tpu.memory_space<vmem>>, %arg5: memref<1x128xf32, #tpu.memory_space<vmem>>, %arg6: memref<128x128xf32, #tpu.memory_space<vmem>>, %arg7: memref<1x128xf32, #tpu.memory_space<vmem>>, %arg8: memref<128x128xf32, #tpu.memory_space<vmem>>, %arg9: memref<1x128xf32, #tpu.memory_space<vmem>>, %arg10: memref<128x128xf32, #tpu.memory_space<vmem>>) attributes {dimension_semantics = [#tpu.dimension_semantics<parallel>], iteration_bounds = array<i64: 1>, scalar_prefetch = 0 : i64, scratch_operands = 0 : i64, tpu.core_type = #tpu.core_type<tc>, window_params = [{transform_indices = @transform_0, window_bounds = array<i64: 128, 128>}, {pipeline_mode = #tpu.pipeline_mode<synchronous>, transform_indices = @transform_1, window_bounds = array<i64: 128, 128>}, {pipeline_mode = #tpu.pipeline_mode<synchronous>, transform_indices = @transform_2, window_bounds = array<i64: 1, 128>}, {pipeline_mode = #tpu.pipeline_mode<synchronous>, transform_indices = @transform_3, window_bounds = array<i64: 128, 128>}, {pipeline_mode = #tpu.pipeline_mode<synchronous>, transform_indices = @transform_4, window_bounds = array<i64: 1, 128>}, {pipeline_mode = #tpu.pipeline_mode<synchronous>, transform_indices = @transform_5, window_bounds = array<i64: 128, 128>}, {pipeline_mode = #tpu.pipeline_mode<synchronous>, transform_indices = @transform_6, window_bounds = array<i64: 1, 128>}, {pipeline_mode = #tpu.pipeline_mode<synchronous>, transform_indices = @transform_7, window_bounds = array<i64: 128, 128>}, {pipeline_mode = #tpu.pipeline_mode<synchronous>, transform_indices = @transform_8, window_bounds = array<i64: 1, 128>}, {transform_indices = @transform_9, window_bounds = array<i64: 128, 128>}]} {
    %c0 = arith.constant 0 : index
    %c0_0 = arith.constant 0 : index
    %0 = vector.load %arg1[%c0, %c0_0] : memref<128x128xf32, #tpu.memory_space<vmem>>, vector<128x128xf32>
    %c0_1 = arith.constant 0 : index
    %c0_2 = arith.constant 0 : index
    %1 = vector.load %arg2[%c0_1, %c0_2] : memref<128x128xf32, #tpu.memory_space<vmem>>, vector<128x128xf32>
    %cst = arith.constant dense<0.000000e+00> : vector<128x128xf32>
    %2 = tpu.matmul %0, %1, %cst {dimension_numbers = #tpu.dot_dimension_numbers<[1], [0], [0], [1], [0, 0, 1, 1], [], []>} : vector<128x128xf32>, vector<128x128xf32>, vector<128x128xf32> -> vector<128x128xf32>
    %c0_3 = arith.constant 0 : index
    %c0_4 = arith.constant 0 : index
    %3 = vector.load %arg3[%c0_3, %c0_4] : memref<1x128xf32, #tpu.memory_space<vmem>>, vector<1x128xf32>
    %4 = vector.broadcast %3 : vector<1x128xf32> to vector<128x128xf32>
    %5 = arith.addf %2, %4 : vector<128x128xf32>
    %cst_5 = arith.constant 0.000000e+00 : f32
    %6 = vector.broadcast %cst_5 : f32 to vector<128x128xf32>
    %7 = arith.maximumf %5, %6 : vector<128x128xf32>
    %c0_6 = arith.constant 0 : index
    %c0_7 = arith.constant 0 : index
    %8 = vector.load %arg4[%c0_6, %c0_7] : memref<128x128xf32, #tpu.memory_space<vmem>>, vector<128x128xf32>
    %cst_8 = arith.constant dense<0.000000e+00> : vector<128x128xf32>
    %9 = tpu.matmul %7, %8, %cst_8 {dimension_numbers = #tpu.dot_dimension_numbers<[1], [0], [0], [1], [0, 0, 1, 1], [], []>} : vector<128x128xf32>, vector<128x128xf32>, vector<128x128xf32> -> vector<128x128xf32>
    %c0_9 = arith.constant 0 : index
    %c0_10 = arith.constant 0 : index
    %10 = vector.load %arg5[%c0_9, %c0_10] : memref<1x128xf32, #tpu.memory_space<vmem>>, vector<1x128xf32>
    %11 = vector.broadcast %10 : vector<1x128xf32> to vector<128x128xf32>
    %12 = arith.addf %9, %11 : vector<128x128xf32>
    %cst_11 = arith.constant 0.000000e+00 : f32
    %13 = vector.broadcast %cst_11 : f32 to vector<128x128xf32>
    %14 = arith.maximumf %12, %13 : vector<128x128xf32>
    %c0_12 = arith.constant 0 : index
    %c0_13 = arith.constant 0 : index
    %15 = vector.load %arg6[%c0_12, %c0_13] : memref<128x128xf32, #tpu.memory_space<vmem>>, vector<128x128xf32>
    %cst_14 = arith.constant dense<0.000000e+00> : vector<128x128xf32>
    %16 = tpu.matmul %14, %15, %cst_14 {dimension_numbers = #tpu.dot_dimension_numbers<[1], [0], [0], [1], [0, 0, 1, 1], [], []>} : vector<128x128xf32>, vector<128x128xf32>, vector<128x128xf32> -> vector<128x128xf32>
    %c0_15 = arith.constant 0 : index
    %c0_16 = arith.constant 0 : index
    %17 = vector.load %arg7[%c0_15, %c0_16] : memref<1x128xf32, #tpu.memory_space<vmem>>, vector<1x128xf32>
    %18 = vector.broadcast %17 : vector<1x128xf32> to vector<128x128xf32>
    %19 = arith.addf %16, %18 : vector<128x128xf32>
    %cst_17 = arith.constant 0.000000e+00 : f32
    %20 = vector.broadcast %cst_17 : f32 to vector<128x128xf32>
    %21 = arith.maximumf %19, %20 : vector<128x128xf32>
    %c0_18 = arith.constant 0 : index
    %c0_19 = arith.constant 0 : index
    %22 = vector.load %arg8[%c0_18, %c0_19] : memref<128x128xf32, #tpu.memory_space<vmem>>, vector<128x128xf32>
    %cst_20 = arith.constant dense<0.000000e+00> : vector<128x128xf32>
    %23 = tpu.matmul %21, %22, %cst_20 {dimension_numbers = #tpu.dot_dimension_numbers<[1], [0], [0], [1], [0, 0, 1, 1], [], []>} : vector<128x128xf32>, vector<128x128xf32>, vector<128x128xf32> -> vector<128x128xf32>
    %c0_21 = arith.constant 0 : index
    %c0_22 = arith.constant 0 : index
    %24 = vector.load %arg9[%c0_21, %c0_22] : memref<1x128xf32, #tpu.memory_space<vmem>>, vector<1x128xf32>
    %25 = vector.broadcast %24 : vector<1x128xf32> to vector<128x128xf32>
    %26 = arith.addf %23, %25 : vector<128x128xf32>
    %c0_23 = arith.constant 0 : index
    %c0_24 = arith.constant 0 : index
    %27 = vector.load %arg10[%c0_23, %c0_24] : memref<128x128xf32, #tpu.memory_space<vmem>>, vector<128x128xf32>
    tpu.vector_store %arg10[%c0_23, %c0_24], %26 {strides = array<i32>} : memref<128x128xf32, #tpu.memory_space<vmem>>, vector<128x128xf32>,
    return
  }
  func.func @transform_0(%arg0: i32) -> (i32, i32) {
    %c0_i32 = arith.constant 0 : i32
    %c0_i32_0 = arith.constant 0 : i32
    return %arg0, %c0_i32 : i32, i32
  }
  func.func @transform_1(%arg0: i32) -> (i32, i32) {
    %c0_i32 = arith.constant 0 : i32
    %c0_i32_0 = arith.constant 0 : i32
    %c0_i32_1 = arith.constant 0 : i32
    return %c0_i32, %c0_i32_0 : i32, i32
  }
  func.func @transform_2(%arg0: i32) -> (i32, i32) {
    %c0_i32 = arith.constant 0 : i32
    %c0_i32_0 = arith.constant 0 : i32
    %c0_i32_1 = arith.constant 0 : i32
    return %c0_i32, %c0_i32_0 : i32, i32
  }
  func.func @transform_3(%arg0: i32) -> (i32, i32) {
    %c0_i32 = arith.constant 0 : i32
    %c0_i32_0 = arith.constant 0 : i32
    %c0_i32_1 = arith.constant 0 : i32
    return %c0_i32, %c0_i32_0 : i32, i32
  }
  func.func @transform_4(%arg0: i32) -> (i32, i32) {
    %c0_i32 = arith.constant 0 : i32
    %c0_i32_0 = arith.constant 0 : i32
    %c0_i32_1 = arith.constant 0 : i32
    return %c0_i32, %c0_i32_0 : i32, i32
  }
  func.func @transform_5(%arg0: i32) -> (i32, i32) {
    %c0_i32 = arith.constant 0 : i32
    %c0_i32_0 = arith.constant 0 : i32
    %c0_i32_1 = arith.constant 0 : i32
    return %c0_i32, %c0_i32_0 : i32, i32
  }
  func.func @transform_6(%arg0: i32) -> (i32, i32) {
    %c0_i32 = arith.constant 0 : i32
    %c0_i32_0 = arith.constant 0 : i32
    %c0_i32_1 = arith.constant 0 : i32
    return %c0_i32, %c0_i32_0 : i32, i32
  }
  func.func @transform_7(%arg0: i32) -> (i32, i32) {
    %c0_i32 = arith.constant 0 : i32
    %c0_i32_0 = arith.constant 0 : i32
    %c0_i32_1 = arith.constant 0 : i32
    return %c0_i32, %c0_i32_0 : i32, i32
  }
  func.func @transform_8(%arg0: i32) -> (i32, i32) {
    %c0_i32 = arith.constant 0 : i32
    %c0_i32_0 = arith.constant 0 : i32
    %c0_i32_1 = arith.constant 0 : i32
    return %c0_i32, %c0_i32_0 : i32, i32
  }
  func.func @transform_9(%arg0: i32) -> (i32, i32) {
    %c0_i32 = arith.constant 0 : i32
    %c0_i32_0 = arith.constant 0 : i32
    return %arg0, %c0_i32 : i32, i32
  }
}

</mosaic_0001>

<bundles_post_ra>
// kernel: tpu_custom_call.1
= control target key start
LH: loop header
LB: loop body
LE: loop exit
PB: predicated region body
PF: predicated region fallthrough
CT: control target
= control target key end

     0   :  { %14 = vsyncpa [#allocation3], 0  ;;  %s1470_s0 = inlined_call_operand.hbm [shape: f32[128,128], index: 0, kind: input, shape index: {}]   ;;  %s1471_s1 = inlined_call_operand.hbm [shape: f32[128,128], index: 1, kind: input, shape index: {}]   ;;  %s1472_s2 = inlined_call_operand.vmem [shape: f32[1,128], index: 2, kind: input, shape index: {}]   ;;  %s1473_s3 = inlined_call_operand.hbm [shape: f32[128,128], index: 3, kind: input, shape index: {}]   ;;  %s1474_s4 = inlined_call_operand.vmem [shape: f32[1,128], index: 4, kind: input, shape index: {}]   ;;  %s1475_s5 = inlined_call_operand.hbm [shape: f32[128,128], index: 5, kind: input, shape index: {}]   ;;  %s1476_s6 = inlined_call_operand.vmem [shape: f32[1,128], index: 6, kind: input, shape index: {}]   ;;  %s1477_s7 = inlined_call_operand.hbm [shape: f32[128,128], index: 7, kind: input, shape index: {}]   ;;  %s1478_s8 = inlined_call_operand.vmem [shape: f32[1,128], index: 8, kind: input, shape index: {}]   ;;  %s1479_s9 = inlined_call_operand.hbm [shape: f32[128,128], index: 9, kind: output, shape index: {}]  }
   0x1   :  { %15 = vsyncpa [#allocation6], 0 }
   0x2   :  { %16 = vsyncpa [#allocation9], 0 }
   0x3   :  { %17 = vsyncpa [#allocation4], 0  ;;  %s1364_s30 = smov [#allocation5]   ;;  %s1365_s11 = smov [#allocation8]  }
   0x4   :  { %s35_s10 = sshll.u32 %s1364_s30, 4  ;;  %s63_s12 = sshll.u32 %s1365_s11, 4  ;;  %s36_s10 = int_to_ptr.vmem [resolvable:$true] %s35_s10  ;;  %s64_s12 = int_to_ptr.vmem [resolvable:$true] %s63_s12 }
   0x5   :  { %s1244_s13 = scalar_lea.vmem %s36_s10, 2048  ;;  %p1249_p1 = scmp.lt.s32.totalorder %s36_s10, %s36_s10 }
   0x6   :  { %p1245_p0 = scmp.ne.s32.totalorder %s36_s10, %s1244_s13  ;;  %p1250_p2 = scmp.lt.s32.totalorder %s1244_s13, %s1244_s13 }
   0x8   :  { %p1251_p3 = por %p1250_p2, %p1249_p1 }
   0xa   :  { %p1252_p4 = pnand %p1251_p3, %p1245_p0 }
   0xc   :  { %1255 = shalt.err (!%p1252_p4)
}
   0xd   :  { %s1366_s14 = smov 128   ;;  %s1367_s15 = smov 8  }
   0xe   :  { %41 = dma.hbm_to_vmem [thread:$0]  %s1471_s1, 2048, %s36_s10, [#allocation6], %s1366_s14, %s1366_s14, %s1367_s15  }
   0xf   :  { %s1264_s18 = scalar_lea.vmem %s64_s12, 2048  ;;  %p1269_p6 = scmp.lt.s32.totalorder %s64_s12, %s64_s12 }
  0x10   :  { %p1265_p5 = scmp.ne.s32.totalorder %s64_s12, %s1264_s18  ;;  %p1270_p7 = scmp.lt.s32.totalorder %s1264_s18, %s1264_s18 }
  0x12   :  { %p1271_p8 = por %p1270_p7, %p1269_p6 }
  0x14   :  { %p1272_p9 = pnand %p1271_p8, %p1265_p5 }
  0x16   :  { %1275 = shalt.err (!%p1272_p9)
}
  0x17   :  { %69 = dma.hbm_to_vmem [thread:$0]  %s1475_s5, 2048, %s64_s12, [#allocation9], %s1366_s14, %s1366_s14, %s1367_s15  }
  0x18   :  { %s1368_s21 = smov [#allocation2]   ;;  %s1369_s23 = smov [#allocation7]  }
  0x19   :  { %s23_s22 = sshll.u32 %s1368_s21, 4  ;;  %s49_s24 = sshll.u32 %s1369_s23, 4  ;;  %s24_s22 = int_to_ptr.vmem [resolvable:$true] %s23_s22  ;;  %s50_s24 = int_to_ptr.vmem [resolvable:$true] %s49_s24 }
  0x1a   :  { %s1284_s1 = scalar_lea.vmem %s24_s22, 2048  ;;  %p1289_p11 = scmp.lt.s32.totalorder %s24_s22, %s24_s22 }
  0x1b   :  { %p1285_p10 = scmp.ne.s32.totalorder %s24_s22, %s1284_s1  ;;  %p1290_p12 = scmp.lt.s32.totalorder %s1284_s1, %s1284_s1 }
  0x1d   :  { %p1291_p13 = por %p1290_p12, %p1289_p11 }
  0x1f   :  { %p1292_p0 = pnand %p1291_p13, %p1285_p10 }
  0x21   :  { %1295 = shalt.err (!%p1292_p0)
}
  0x22   :  { %29 = dma.hbm_to_vmem [thread:$0]  %s1470_s0, 2048, %s24_s22, [#allocation3], %s1366_s14, %s1366_s14, %s1367_s15  }
  0x23   :  { %s1304_s5 = scalar_lea.vmem %s50_s24, 2048  ;;  %p1309_p2 = scmp.lt.s32.totalorder %s50_s24, %s50_s24 }
  0x24   :  { %p1305_p1 = scmp.ne.s32.totalorder %s50_s24, %s1304_s5  ;;  %p1310_p3 = scmp.lt.s32.totalorder %s1304_s5, %s1304_s5 }
  0x26   :  { %p1311_p4 = por %p1310_p3, %p1309_p2 }
  0x28   :  { %p1312_p5 = pnand %p1311_p4, %p1305_p1 }
  0x2a   :  { %1315 = shalt.err (!%p1312_p5)
}
  0x2b   :  { %55 = dma.hbm_to_vmem [thread:$0]  %s1473_s3, 2048, %s50_s24, [#allocation6], %s1366_s14, %s1366_s14, %s1367_s15  }
  0x2c   :  { %s1370_s29 = smov [#allocation10]  }
  0x2d   :  { %s77_s30 = sshll.u32 %s1370_s29, 4  ;;  %s78_s30 = int_to_ptr.vmem [resolvable:$true] %s77_s30 }
  0x2e   :  { %s1324_s10 = scalar_lea.vmem %s78_s30, 2048  ;;  %p1329_p7 = scmp.lt.s32.totalorder %s78_s30, %s78_s30 }
  0x2f   :  { %p1325_p6 = scmp.ne.s32.totalorder %s78_s30, %s1324_s10  ;;  %p1330_p8 = scmp.lt.s32.totalorder %s1324_s10, %s1324_s10 }
  0x31   :  { %p1331_p9 = por %p1330_p8, %p1329_p7 }
  0x33   :  { %p1332_p10 = pnand %p1331_p9, %p1325_p6 }
  0x35   :  { %1335 = shalt.err (!%p1332_p10)
}
  0x36   :  { %83 = dma.hbm_to_vmem [thread:$0]  %s1477_s7, 2048, %s78_s30, [#allocation9], %s1366_s14, %s1366_s14, %s1367_s15  }
  0x37   :  { %1356 = dma.done.wait [#allocation3], 2048  }
  0x38   :  { %1357 = vsyncadd [#allocation3], 4294965248 }
  0x39   :  { %1358 = dma.done.wait [#allocation6], 4096  }
  0x3a   :  { %1359 = vsyncadd [#allocation6], 4294963200 }
  0x3b   :  { %1360 = dma.done.wait [#allocation9], 4096  }
  0x3c   :  { %1361 = vsyncadd [#allocation9], 4294963200  ;;  %v132_v0 = vld [vmem:[#allocation5 + $0x78] sm:$0xff]  ;;  %v131_v1 = vld [vmem:[#allocation5 + $0x70] sm:$0xff] }
  0x3d   :  { %1004 = vmatprep.subr.mxu0 %v132_v0  ;;  %v130_v2 = vld [vmem:[#allocation5 + $0x68] sm:$0xff]  ;;  %v129_v3 = vld [vmem:[#allocation5 + $0x60] sm:$0xff]  ;;  %v128_v5 = vld [vmem:[#allocation5 + $0x58] sm:$0xff] }
  0x3e   :  { %1005 = vmatpush3.msra.mxu0 %v132_v0  ;;  %v101_v4 = vld [vmem:[#allocation2] sm:$0xff]  ;;  %v127_v6 = vld [vmem:[#allocation5 + $0x50] sm:$0xff]  ;;  %v126_v7 = vld [vmem:[#allocation5 + $0x48] sm:$0xff] }
  0x3f   :  { %1006 = vmatprep.subr.mxu0 %v131_v1  ;;  %1036 = vmatprep.mubr.f32.mxu0 %v101_v4  ;;  %v316_v8 = vld [vmem:[#allocation7 + $0x78] sm:$0xff]  ;;  %v315_v9 = vld [vmem:[#allocation7 + $0x70] sm:$0xff]  ;;  %v125_v10 = vld [vmem:[#allocation5 + $0x40] sm:$0xff] }
  0x40   :  { %1007 = vmatpush3.msra.mxu0 %v131_v1  ;;  %1060 = vmatprep.subr.mxu1 %v316_v8  ;;  %v314_v11 = vld [vmem:[#allocation7 + $0x68] sm:$0xff]  ;;  %v124_v12 = vld [vmem:[#allocation5 + $0x38] sm:$0xff]  ;;  %v313_v13 = vld [vmem:[#allocation7 + $0x60] sm:$0xff] }
  0x41   :  { %1008 = vmatprep.subr.mxu0 %v130_v2  ;;  %1061 = vmatpush3.msra.mxu1 %v316_v8  ;;  %v123_v14 = vld [vmem:[#allocation5 + $0x30] sm:$0xff]  ;;  %v312_v15 = vld [vmem:[#allocation7 + $0x58] sm:$0xff]  ;;  %v122_v16 = vld [vmem:[#allocation5 + $0x28] sm:$0xff] }
  0x42   :  { %1009 = vmatpush3.msra.mxu0 %v130_v2  ;;  %1062 = vmatprep.subr.mxu1 %v315_v9  ;;  %v311_v17 = vld [vmem:[#allocation7 + $0x50] sm:$0xff]  ;;  %v121_v18 = vld [vmem:[#allocation5 + $0x20] sm:$0xff]  ;;  %v310_v19 = vld [vmem:[#allocation7 + $0x48] sm:$0xff] }
  0x43   :  { %1010 = vmatprep.subr.mxu0 %v129_v3  ;;  %1063 = vmatpush3.msra.mxu1 %v315_v9  ;;  %v120_v20 = vld [vmem:[#allocation5 + $0x18] sm:$0xff]  ;;  %v309_v21 = vld [vmem:[#allocation7 + $0x40] sm:$0xff]  ;;  %v119_v22 = vld [vmem:[#allocation5 + $0x10] sm:$0xff] }
  0x44   :  { %1011 = vmatpush3.msra.mxu0 %v129_v3  ;;  %1064 = vmatprep.subr.mxu1 %v314_v11  ;;  %v308_v23 = vld [vmem:[#allocation7 + $0x38] sm:$0xff]  ;;  %v118_v24 = vld [vmem:[#allocation5 + $0x8] sm:$0xff]  ;;  %v307_v25 = vld [vmem:[#allocation7 + $0x30] sm:$0xff] }
  0x45   :  { %1012 = vmatprep.subr.mxu0 %v128_v5  ;;  %1065 = vmatpush3.msra.mxu1 %v314_v11  ;;  %v117_v26 = vld [vmem:[#allocation5] sm:$0xff]  ;;  %v306_v27 = vld [vmem:[#allocation7 + $0x28] sm:$0xff]  ;;  %v103_v30 = vld [vmem:[#allocation2 + $0x10] sm:$0xff] }
  0x46   :  { %1013 = vmatpush3.msra.mxu0 %v128_v5  ;;  %1066 = vmatprep.subr.mxu1 %v313_v13  ;;  %v102_v28 = vld [vmem:[#allocation2 + $0x8] sm:$0xff]  ;;  %v305_v29 = vld [vmem:[#allocation7 + $0x20] sm:$0xff]  ;;  %v104_v31 = vld [vmem:[#allocation2 + $0x18] sm:$0xff] }
  0x47   :  { %1014 = vmatprep.subr.mxu0 %v127_v6  ;;  %1067 = vmatpush3.msra.mxu1 %v313_v13  ;;  %v105_v32 = vld [vmem:[#allocation2 + $0x20] sm:$0xff]  ;;  %v106_v33 = vld [vmem:[#allocation2 + $0x28] sm:$0xff]  ;;  %v107_v34 = vld [vmem:[#allocation2 + $0x30] sm:$0xff] }
  0x48   :  { %1015 = vmatpush3.msra.mxu0 %v127_v6  ;;  %1068 = vmatprep.subr.mxu1 %v312_v15  ;;  %v108_v35 = vld [vmem:[#allocation2 + $0x38] sm:$0xff]  ;;  %v109_v36 = vld [vmem:[#allocation2 + $0x40] sm:$0xff]  ;;  %v110_v37 = vld [vmem:[#allocation2 + $0x48] sm:$0xff] }
  0x49   :  { %1016 = vmatprep.subr.mxu0 %v126_v7  ;;  %1069 = vmatpush3.msra.mxu1 %v312_v15  ;;  %v111_v38 = vld [vmem:[#allocation2 + $0x50] sm:$0xff]  ;;  %v112_v39 = vld [vmem:[#allocation2 + $0x58] sm:$0xff]  ;;  %v113_v40 = vld [vmem:[#allocation2 + $0x60] sm:$0xff] }
  0x4a   :  { %1017 = vmatpush3.msra.mxu0 %v126_v7  ;;  %1070 = vmatprep.subr.mxu1 %v311_v17  ;;  %v114_v41 = vld [vmem:[#allocation2 + $0x68] sm:$0xff]  ;;  %v115_v42 = vld [vmem:[#allocation2 + $0x70] sm:$0xff]  ;;  %v116_v43 = vld [vmem:[#allocation2 + $0x78] sm:$0xff] }
  0x4b   :  { %1018 = vmatprep.subr.mxu0 %v125_v10  ;;  %1071 = vmatpush3.msra.mxu1 %v311_v17  ;;  %v304_v44 = vld [vmem:[#allocation7 + $0x18] sm:$0xff]  ;;  %v303_v45 = vld [vmem:[#allocation7 + $0x10] sm:$0xff]  ;;  %v302_v46 = vld [vmem:[#allocation7 + $0x8] sm:$0xff] }
  0x4c   :  { %1019 = vmatpush3.msra.mxu0 %v125_v10  ;;  %1072 = vmatprep.subr.mxu1 %v310_v19  ;;  %v301_v47 = vld [vmem:[#allocation7] sm:$0xff]  ;;  %v500_v48 = vld [vmem:[#allocation8 + $0x78] sm:$0xff]  ;;  %v499_v49 = vld [vmem:[#allocation8 + $0x70] sm:$0xff] }
  0x4d   :  { %1020 = vmatprep.subr.mxu0 %v124_v12  ;;  %1073 = vmatpush3.msra.mxu1 %v310_v19  ;;  %v498_v50 = vld [vmem:[#allocation8 + $0x68] sm:$0xff]  ;;  %v497_v51 = vld [vmem:[#allocation8 + $0x60] sm:$0xff]  ;;  %v496_v52 = vld [vmem:[#allocation8 + $0x58] sm:$0xff] }
  0x4e   :  { %1021 = vmatpush3.msra.mxu0 %v124_v12  ;;  %1074 = vmatprep.subr.mxu1 %v309_v21  ;;  %v495_v53 = vld [vmem:[#allocation8 + $0x50] sm:$0xff]  ;;  %v494_v54 = vld [vmem:[#allocation8 + $0x48] sm:$0xff]  ;;  %v493_v55 = vld [vmem:[#allocation8 + $0x40] sm:$0xff] }
  0x4f   :  { %1022 = vmatprep.subr.mxu0 %v123_v14  ;;  %1075 = vmatpush3.msra.mxu1 %v309_v21  ;;  %v492_v56 = vld [vmem:[#allocation8 + $0x38] sm:$0xff]  ;;  %v491_v57 = vld [vmem:[#allocation8 + $0x30] sm:$0xff]  ;;  %v490_v58 = vld [vmem:[#allocation8 + $0x28] sm:$0xff] }
  0x50   :  { %1023 = vmatpush3.msra.mxu0 %v123_v14  ;;  %1076 = vmatprep.subr.mxu1 %v308_v23  ;;  %v489_v59 = vld [vmem:[#allocation8 + $0x20] sm:$0xff]  ;;  %v488_v60 = vld [vmem:[#allocation8 + $0x18] sm:$0xff] }
  0x51   :  { %1024 = vmatprep.subr.mxu0 %v122_v16  ;;  %1077 = vmatpush3.msra.mxu1 %v308_v23  ;;  %v872_v61 = vld [vmem:[%s1472_s2] ss:$0 sm:$0xff] }
  0x52   :  { %1025 = vmatpush3.msra.mxu0 %v122_v16  ;;  %1078 = vmatprep.subr.mxu1 %v307_v25 }
  0x53   :  { %1026 = vmatprep.subr.mxu0 %v121_v18  ;;  %1079 = vmatpush3.msra.mxu1 %v307_v25 }
  0x54   :  { %1027 = vmatpush3.msra.mxu0 %v121_v18  ;;  %1080 = vmatprep.subr.mxu1 %v306_v27 }
  0x55   :  { %1028 = vmatprep.subr.mxu0 %v120_v20  ;;  %1081 = vmatpush3.msra.mxu1 %v306_v27 }
  0x56   :  { %1029 = vmatpush3.msra.mxu0 %v120_v20  ;;  %1082 = vmatprep.subr.mxu1 %v305_v29 }
  0x57   :  { %1030 = vmatprep.subr.mxu0 %v119_v22  ;;  %1083 = vmatpush3.msra.mxu1 %v305_v29 }
  0x58   :  { %1031 = vmatpush3.msra.mxu0 %v119_v22  ;;  %1084 = vmatprep.subr.mxu1 %v304_v44 }
  0x59   :  { %1032 = vmatprep.subr.mxu0 %v118_v24  ;;  %1085 = vmatpush3.msra.mxu1 %v304_v44 }
  0x5a   :  { %1033 = vmatpush3.msra.mxu0 %v118_v24  ;;  %1086 = vmatprep.subr.mxu1 %v303_v45 }
  0x5b   :  { %1034 = vmatprep.subr.mxu0 %v117_v26  ;;  %1087 = vmatpush3.msra.mxu1 %v303_v45 }
  0x5c   :  { %1035 = vmatpush3.msra.mxu0 %v117_v26  ;;  %1088 = vmatprep.subr.mxu1 %v302_v46 }
  0x5d   :  { %1037 = vmatmul.mubr.f32.vlgmr.msra.gmra.mxu0 %v102_v28  ;;  %1089 = vmatpush3.msra.mxu1 %v302_v46  ;;  %v487_v46 = vld [vmem:[#allocation8 + $0x10] sm:$0xff] }
  0x5e   :  { %1039 = vmatprep.mubr.f32.mxu0 %v103_v30  ;;  %1090 = vmatprep.subr.mxu1 %v301_v47 }
  0x5f   :  { %1091 = vmatpush3.msra.mxu1 %v301_v47  ;;  %1116 = vmatprep.subr.mxu0 %v500_v48  ;;  %v486_v47 = vld [vmem:[#allocation8 + $0x8] sm:$0xff] }
  0x60   :  { %1117 = vmatpush3.msra.mxu0 %v500_v48  ;;  %v485_v48 = vld [vmem:[#allocation8] sm:$0xff] }
  0x61   :  { %1040 = vmatmul.mubr.f32.gmra.mxu0 %v104_v31  ;;  %1118 = vmatprep.subr.mxu0 %v499_v49 }
  0x62   :  { %1042 = vmatprep.mubr.f32.mxu0 %v105_v32  ;;  %1119 = vmatpush3.msra.mxu0 %v499_v49  ;;  %v684_v49 = vld [vmem:[#allocation10 + $0x78] sm:$0xff] }
  0x63   :  { %1120 = vmatprep.subr.mxu0 %v498_v50  ;;  %1172 = vmatprep.subr.mxu1 %v684_v49 }
  0x64   :  { %1121 = vmatpush3.msra.mxu0 %v498_v50  ;;  %v683_v50 = vld [vmem:[#allocation10 + $0x70] sm:$0xff] }
  0x65   :  { %1043 = vmatmul.mubr.f32.gmra.mxu0 %v106_v33  ;;  %1122 = vmatprep.subr.mxu0 %v497_v51 }
  0x66   :  { %1045 = vmatprep.mubr.f32.mxu0 %v107_v34  ;;  %1123 = vmatpush3.msra.mxu0 %v497_v51  ;;  %v682_v51 = vld [vmem:[#allocation10 + $0x68] sm:$0xff] }
  0x67   :  { %1124 = vmatprep.subr.mxu0 %v496_v52 }
  0x68   :  { %1125 = vmatpush3.msra.mxu0 %v496_v52  ;;  %v681_v52 = vld [vmem:[#allocation10 + $0x60] sm:$0xff] }
  0x69   :  { %1046 = vmatmul.mubr.f32.gmra.mxu0 %v108_v35  ;;  %1126 = vmatprep.subr.mxu0 %v495_v53 }
  0x6a   :  { %1048 = vmatprep.mubr.f32.mxu0 %v109_v36  ;;  %1127 = vmatpush3.msra.mxu0 %v495_v53  ;;  %v680_v53 = vld [vmem:[#allocation10 + $0x58] sm:$0xff] }
  0x6b   :  { %1128 = vmatprep.subr.mxu0 %v494_v54 }
  0x6c   :  { %1129 = vmatpush3.msra.mxu0 %v494_v54  ;;  %v679_v54 = vld [vmem:[#allocation10 + $0x50] sm:$0xff] }
  0x6d   :  { %1049 = vmatmul.mubr.f32.gmra.mxu0 %v110_v37  ;;  %1130 = vmatprep.subr.mxu0 %v493_v55 }
  0x6e   :  { %1051 = vmatprep.mubr.f32.mxu0 %v111_v38  ;;  %1131 = vmatpush3.msra.mxu0 %v493_v55  ;;  %v678_v55 = vld [vmem:[#allocation10 + $0x48] sm:$0xff] }
  0x6f   :  { %1132 = vmatprep.subr.mxu0 %v492_v56 }
  0x70   :  { %1133 = vmatpush3.msra.mxu0 %v492_v56  ;;  %v677_v56 = vld [vmem:[#allocation10 + $0x40] sm:$0xff] }
  0x71   :  { %1052 = vmatmul.mubr.f32.gmra.mxu0 %v112_v39  ;;  %1134 = vmatprep.subr.mxu0 %v491_v57 }
  0x72   :  { %1054 = vmatprep.mubr.f32.mxu0 %v113_v40  ;;  %1135 = vmatpush3.msra.mxu0 %v491_v57  ;;  %v676_v57 = vld [vmem:[#allocation10 + $0x38] sm:$0xff] }
  0x73   :  { %1136 = vmatprep.subr.mxu0 %v490_v58 }
  0x74   :  { %1137 = vmatpush3.msra.mxu0 %v490_v58  ;;  %v675_v58 = vld [vmem:[#allocation10 + $0x30] sm:$0xff] }
  0x75   :  { %1055 = vmatmul.mubr.f32.gmra.mxu0 %v114_v41  ;;  %1138 = vmatprep.subr.mxu0 %v489_v59 }
  0x76   :  { %1057 = vmatprep.mubr.f32.mxu0 %v115_v42  ;;  %1139 = vmatpush3.msra.mxu0 %v489_v59  ;;  %v674_v59 = vld [vmem:[#allocation10 + $0x28] sm:$0xff] }
  0x77   :  { %1140 = vmatprep.subr.mxu0 %v488_v60 }
  0x78   :  { %1141 = vmatpush3.msra.mxu0 %v488_v60  ;;  %v673_v60 = vld [vmem:[#allocation10 + $0x20] sm:$0xff] }
  0x79   :  { %1058 = vmatmul.mubr.f32.gmra.mxu0 %v116_v43  ;;  %1142 = vmatprep.subr.mxu0 %v487_v46 }
  0x7a   :  { %1143 = vmatpush3.msra.mxu0 %v487_v46 }
  0x7b   :  { %1144 = vmatprep.subr.mxu0 %v486_v47 }
  0x7c   :  { %1145 = vmatpush3.msra.mxu0 %v486_v47  ;;  %v671_v47 = vld [vmem:[#allocation10 + $0x10] sm:$0xff] }
  0x7d   :  { %1146 = vmatprep.subr.mxu0 %v485_v48 }
  0x7e   :  { %1147 = vmatpush3.msra.mxu0 %v485_v48  ;;  %v670_v48 = vld [vmem:[#allocation10 + $0x8] sm:$0xff] }
 0x11d   :  { %v1038_v62 = vpop.f32.mrf.mxu0 }
 0x11e   :  { %v212_v63 = vadd.f32 %v1038_v62, %v872_v61  ;;  %v873_v62 = vld [vmem:[%s1474_s4] ss:$0 sm:$0xff] }
 0x11f   :  { %v206_v0 = vpop.f32.mrf.mxu0 }
 0x120   :  { %v207_v1 = vadd.f32 %v872_v61, %v206_v0  ;;  %v286_v4 = vmax.f32 %v212_v63, 0.0 }
 0x121   :  { %v1041_v2 = vpop.f32.mrf.mxu0 }
 0x122   :  { %v285_v3 = vmax.f32 %v207_v1, 0.0  ;;  %v222_v5 = vadd.f32 %v1041_v2, %v872_v61 }
 0x123   :  { %v216_v6 = vpop.f32.mrf.mxu0 }
 0x124   :  { %v217_v7 = vadd.f32 %v872_v61, %v216_v6  ;;  %1092 = vmatprep.mubr.f32.mxu1 %v285_v3  ;;  %v288_v10 = vmax.f32 %v222_v5, 0.0 }
 0x125   :  { %v1044_v8 = vpop.f32.mrf.mxu0  ;;  %1093 = vmatmul.mubr.f32.vlgmr.msra.gmra.mxu1 %v286_v4 }
 0x126   :  { %v287_v9 = vmax.f32 %v217_v7, 0.0  ;;  %v232_v11 = vadd.f32 %v1044_v8, %v872_v61  ;;  %1173 = vmatpush3.msra.mxu1 %v684_v49  ;;  %v669_v49 = vld [vmem:[#allocation10] sm:$0xff] }
 0x127   :  { %v226_v12 = vpop.f32.mrf.mxu0  ;;  %1174 = vmatprep.subr.mxu1 %v683_v50 }
 0x128   :  { %v227_v13 = vadd.f32 %v872_v61, %v226_v12  ;;  %1095 = vmatprep.mubr.f32.mxu1 %v287_v9  ;;  %v290_v16 = vmax.f32 %v232_v11, 0.0  ;;  %1175 = vmatpush3.msra.mxu1 %v683_v50  ;;  %v874_v50 = vld [vmem:[%s1476_s6] ss:$0 sm:$0xff] }
 0x129   :  { %v1047_v14 = vpop.f32.mrf.mxu0  ;;  %1096 = vmatmul.mubr.f32.gmra.mxu1 %v288_v10  ;;  %1176 = vmatprep.subr.mxu1 %v682_v51 }
 0x12a   :  { %v289_v15 = vmax.f32 %v227_v13, 0.0  ;;  %v242_v17 = vadd.f32 %v1047_v14, %v872_v61  ;;  %1177 = vmatpush3.msra.mxu1 %v682_v51 }
 0x12b   :  { %v236_v18 = vpop.f32.mrf.mxu0  ;;  %1178 = vmatprep.subr.mxu1 %v681_v52 }
 0x12c   :  { %v237_v19 = vadd.f32 %v872_v61, %v236_v18  ;;  %1098 = vmatprep.mubr.f32.mxu1 %v289_v15  ;;  %v292_v22 = vmax.f32 %v242_v17, 0.0  ;;  %1179 = vmatpush3.msra.mxu1 %v681_v52 }
 0x12d   :  { %v1050_v20 = vpop.f32.mrf.mxu0  ;;  %1099 = vmatmul.mubr.f32.gmra.mxu1 %v290_v16  ;;  %1180 = vmatprep.subr.mxu1 %v680_v53 }
 0x12e   :  { %v291_v21 = vmax.f32 %v237_v19, 0.0  ;;  %v252_v23 = vadd.f32 %v1050_v20, %v872_v61  ;;  %1181 = vmatpush3.msra.mxu1 %v680_v53 }
 0x12f   :  { %v246_v24 = vpop.f32.mrf.mxu0  ;;  %1182 = vmatprep.subr.mxu1 %v679_v54 }
 0x130   :  { %v247_v25 = vadd.f32 %v872_v61, %v246_v24  ;;  %1101 = vmatprep.mubr.f32.mxu1 %v291_v21  ;;  %v294_v28 = vmax.f32 %v252_v23, 0.0  ;;  %1183 = vmatpush3.msra.mxu1 %v679_v54 }
 0x131   :  { %v1053_v26 = vpop.f32.mrf.mxu0  ;;  %1102 = vmatmul.mubr.f32.gmra.mxu1 %v292_v22  ;;  %1184 = vmatprep.subr.mxu1 %v678_v55 }
 0x132   :  { %v293_v27 = vmax.f32 %v247_v25, 0.0  ;;  %v262_v29 = vadd.f32 %v1053_v26, %v872_v61  ;;  %1185 = vmatpush3.msra.mxu1 %v678_v55 }
 0x133   :  { %v256_v30 = vpop.f32.mrf.mxu0  ;;  %1186 = vmatprep.subr.mxu1 %v677_v56 }
 0x134   :  { %v257_v31 = vadd.f32 %v872_v61, %v256_v30  ;;  %1104 = vmatprep.mubr.f32.mxu1 %v293_v27  ;;  %v296_v34 = vmax.f32 %v262_v29, 0.0  ;;  %1187 = vmatpush3.msra.mxu1 %v677_v56 }
 0x135   :  { %v1056_v32 = vpop.f32.mrf.mxu0  ;;  %1105 = vmatmul.mubr.f32.gmra.mxu1 %v294_v28  ;;  %1188 = vmatprep.subr.mxu1 %v676_v57 }
 0x136   :  { %v295_v33 = vmax.f32 %v257_v31, 0.0  ;;  %v272_v35 = vadd.f32 %v1056_v32, %v872_v61  ;;  %1189 = vmatpush3.msra.mxu1 %v676_v57 }
 0x137   :  { %v266_v36 = vpop.f32.mrf.mxu0  ;;  %1190 = vmatprep.subr.mxu1 %v675_v58 }
 0x138   :  { %v267_v37 = vadd.f32 %v872_v61, %v266_v36  ;;  %1107 = vmatprep.mubr.f32.mxu1 %v295_v33  ;;  %v298_v40 = vmax.f32 %v272_v35, 0.0  ;;  %1191 = vmatpush3.msra.mxu1 %v675_v58 }
 0x139   :  { %v1059_v38 = vpop.f32.mrf.mxu0  ;;  %1108 = vmatmul.mubr.f32.gmra.mxu1 %v296_v34  ;;  %1192 = vmatprep.subr.mxu1 %v674_v59 }
 0x13a   :  { %v297_v39 = vmax.f32 %v267_v37, 0.0  ;;  %v282_v41 = vadd.f32 %v1059_v38, %v872_v61  ;;  %1193 = vmatpush3.msra.mxu1 %v674_v59 }
 0x13b   :  { %v276_v42 = vpop.f32.mrf.mxu0  ;;  %1194 = vmatprep.subr.mxu1 %v673_v60 }
 0x13c   :  { %v277_v43 = vadd.f32 %v872_v61, %v276_v42  ;;  %1110 = vmatprep.mubr.f32.mxu1 %v297_v39  ;;  %v300_v45 = vmax.f32 %v282_v41, 0.0  ;;  %v672_v61 = vld [vmem:[#allocation10 + $0x18] sm:$0xff]  ;;  %1195 = vmatpush3.msra.mxu1 %v673_v60 }
 0x13d   :  { %1111 = vmatmul.mubr.f32.gmra.mxu1 %v298_v40  ;;  %1196 = vmatprep.subr.mxu1 %v672_v61 }
 0x13e   :  { %v299_v44 = vmax.f32 %v277_v43, 0.0  ;;  %1197 = vmatpush3.msra.mxu1 %v672_v61 }
 0x13f   :  { %1198 = vmatprep.subr.mxu1 %v671_v47 }
 0x140   :  { %1113 = vmatprep.mubr.f32.mxu1 %v299_v44  ;;  %1199 = vmatpush3.msra.mxu1 %v671_v47 }
 0x141   :  { %1114 = vmatmul.mubr.f32.gmra.mxu1 %v300_v45  ;;  %1200 = vmatprep.subr.mxu1 %v670_v48 }
 0x142   :  { %1201 = vmatpush3.msra.mxu1 %v670_v48 }
 0x143   :  { %1202 = vmatprep.subr.mxu1 %v669_v49 }
 0x144   :  { %1203 = vmatpush3.msra.mxu1 %v669_v49 }
 0x1e5   :  { %v1094_v63 = vpop.f32.mrf.mxu1 }
 0x1e6   :  { %v396_v0 = vadd.f32 %v1094_v63, %v873_v62 }
 0x1e7   :  { %v390_v1 = vpop.f32.mrf.mxu1 }
 0x1e8   :  { %v391_v2 = vadd.f32 %v873_v62, %v390_v1  ;;  %v470_v5 = vmax.f32 %v396_v0, 0.0 }
 0x1e9   :  { %v1097_v3 = vpop.f32.mrf.mxu1 }
 0x1ea   :  { %v469_v4 = vmax.f32 %v391_v2, 0.0  ;;  %v406_v6 = vadd.f32 %v1097_v3, %v873_v62 }
 0x1eb   :  { %v400_v7 = vpop.f32.mrf.mxu1 }
 0x1ec   :  { %v401_v8 = vadd.f32 %v873_v62, %v400_v7  ;;  %1148 = vmatprep.mubr.f32.mxu0 %v469_v4  ;;  %v472_v11 = vmax.f32 %v406_v6, 0.0 }
 0x1ed   :  { %v1100_v9 = vpop.f32.mrf.mxu1  ;;  %1149 = vmatmul.mubr.f32.vlgmr.msra.gmra.mxu0 %v470_v5 }
 0x1ee   :  { %v471_v10 = vmax.f32 %v401_v8, 0.0  ;;  %v416_v12 = vadd.f32 %v1100_v9, %v873_v62 }
 0x1ef   :  { %v410_v13 = vpop.f32.mrf.mxu1 }
 0x1f0   :  { %v411_v14 = vadd.f32 %v873_v62, %v410_v13  ;;  %1151 = vmatprep.mubr.f32.mxu0 %v471_v10  ;;  %v474_v17 = vmax.f32 %v416_v12, 0.0 }
 0x1f1   :  { %v1103_v15 = vpop.f32.mrf.mxu1  ;;  %1152 = vmatmul.mubr.f32.gmra.mxu0 %v472_v11 }
 0x1f2   :  { %v473_v16 = vmax.f32 %v411_v14, 0.0  ;;  %v426_v18 = vadd.f32 %v1103_v15, %v873_v62 }
 0x1f3   :  { %v420_v19 = vpop.f32.mrf.mxu1 }
 0x1f4   :  { %v421_v20 = vadd.f32 %v873_v62, %v420_v19  ;;  %1154 = vmatprep.mubr.f32.mxu0 %v473_v16  ;;  %v476_v23 = vmax.f32 %v426_v18, 0.0 }
 0x1f5   :  { %v1106_v21 = vpop.f32.mrf.mxu1  ;;  %1155 = vmatmul.mubr.f32.gmra.mxu0 %v474_v17 }
 0x1f6   :  { %v475_v22 = vmax.f32 %v421_v20, 0.0  ;;  %v436_v24 = vadd.f32 %v1106_v21, %v873_v62 }
 0x1f7   :  { %v430_v25 = vpop.f32.mrf.mxu1 }
 0x1f8   :  { %v431_v26 = vadd.f32 %v873_v62, %v430_v25  ;;  %1157 = vmatprep.mubr.f32.mxu0 %v475_v22  ;;  %v478_v29 = vmax.f32 %v436_v24, 0.0 }
 0x1f9   :  { %v1109_v27 = vpop.f32.mrf.mxu1  ;;  %1158 = vmatmul.mubr.f32.gmra.mxu0 %v476_v23 }
 0x1fa   :  { %v477_v28 = vmax.f32 %v431_v26, 0.0  ;;  %v446_v30 = vadd.f32 %v1109_v27, %v873_v62 }
 0x1fb   :  { %v440_v31 = vpop.f32.mrf.mxu1 }
 0x1fc   :  { %v441_v32 = vadd.f32 %v873_v62, %v440_v31  ;;  %1160 = vmatprep.mubr.f32.mxu0 %v477_v28  ;;  %v480_v35 = vmax.f32 %v446_v30, 0.0 }
 0x1fd   :  { %v1112_v33 = vpop.f32.mrf.mxu1  ;;  %1161 = vmatmul.mubr.f32.gmra.mxu0 %v478_v29 }
 0x1fe   :  { %v479_v34 = vmax.f32 %v441_v32, 0.0  ;;  %v456_v36 = vadd.f32 %v1112_v33, %v873_v62 }
 0x1ff   :  { %v450_v37 = vpop.f32.mrf.mxu1 }
 0x200   :  { %v451_v38 = vadd.f32 %v873_v62, %v450_v37  ;;  %1163 = vmatprep.mubr.f32.mxu0 %v479_v34  ;;  %v482_v41 = vmax.f32 %v456_v36, 0.0 }
 0x201   :  { %v1115_v39 = vpop.f32.mrf.mxu1  ;;  %1164 = vmatmul.mubr.f32.gmra.mxu0 %v480_v35  ;;  %v875_v35 = vld [vmem:[%s1478_s8] ss:$0 sm:$0xff]  ;;  %s1371_s8 = smov [#allocation11]  }
 0x202   :  { %v481_v40 = vmax.f32 %v451_v38, 0.0  ;;  %v466_v42 = vadd.f32 %v1115_v39, %v873_v62  ;;  %s858_s17 = sshll.u32 %s1371_s8, 4  ;;  %s859_s17 = int_to_ptr.vmem [resolvable:$true] %s858_s17 }
 0x203   :  { %v460_v43 = vpop.f32.mrf.mxu1  ;;  %s1336_s18 = scalar_lea.vmem %s859_s17, 2048  ;;  %p1341_p12 = scmp.lt.s32.totalorder %s859_s17, %s859_s17 }
 0x204   :  { %v461_v44 = vadd.f32 %v873_v62, %v460_v43  ;;  %1166 = vmatprep.mubr.f32.mxu0 %v481_v40  ;;  %v484_v46 = vmax.f32 %v466_v42, 0.0  ;;  %p1337_p11 = scmp.ne.s32.totalorder %s859_s17, %s1336_s18  ;;  %p1342_p13 = scmp.lt.s32.totalorder %s1336_s18, %s1336_s18 }
 0x205   :  { %1167 = vmatmul.mubr.f32.gmra.mxu0 %v482_v41 }
 0x206   :  { %v483_v45 = vmax.f32 %v461_v44, 0.0  ;;  %p1343_p0 = por %p1342_p13, %p1341_p12 }
 0x208   :  { %1169 = vmatprep.mubr.f32.mxu0 %v483_v45  ;;  %p1344_p1 = pnand %p1343_p0, %p1337_p11 }
 0x209   :  { %1170 = vmatmul.mubr.f32.gmra.mxu0 %v484_v46 }
 0x2ad   :  { %v1150_v51 = vpop.f32.mrf.mxu0 }
 0x2ae   :  { %v580_v52 = vadd.f32 %v1150_v51, %v874_v50 }
 0x2af   :  { %v574_v53 = vpop.f32.mrf.mxu0 }
 0x2b0   :  { %v575_v54 = vadd.f32 %v874_v50, %v574_v53  ;;  %v654_v57 = vmax.f32 %v580_v52, 0.0 }
 0x2b1   :  { %v1153_v55 = vpop.f32.mrf.mxu0 }
 0x2b2   :  { %v653_v56 = vmax.f32 %v575_v54, 0.0  ;;  %v590_v58 = vadd.f32 %v1153_v55, %v874_v50 }
 0x2b3   :  { %v584_v59 = vpop.f32.mrf.mxu0 }
 0x2b4   :  { %v585_v60 = vadd.f32 %v874_v50, %v584_v59  ;;  %1204 = vmatprep.mubr.f32.mxu1 %v653_v56  ;;  %v656_v63 = vmax.f32 %v590_v58, 0.0 }
 0x2b5   :  { %v1156_v61 = vpop.f32.mrf.mxu0  ;;  %1205 = vmatmul.mubr.f32.vlgmr.msra.gmra.mxu1 %v654_v57 }
 0x2b6   :  { %v655_v62 = vmax.f32 %v585_v60, 0.0  ;;  %v600_v0 = vadd.f32 %v1156_v61, %v874_v50 }
 0x2b7   :  { %v594_v1 = vpop.f32.mrf.mxu0 }
 0x2b8   :  { %v595_v2 = vadd.f32 %v874_v50, %v594_v1  ;;  %1207 = vmatprep.mubr.f32.mxu1 %v655_v62  ;;  %v658_v5 = vmax.f32 %v600_v0, 0.0 }
 0x2b9   :  { %v1159_v3 = vpop.f32.mrf.mxu0  ;;  %1208 = vmatmul.mubr.f32.gmra.mxu1 %v656_v63 }
 0x2ba   :  { %v657_v4 = vmax.f32 %v595_v2, 0.0  ;;  %v610_v6 = vadd.f32 %v1159_v3, %v874_v50 }
 0x2bb   :  { %v604_v7 = vpop.f32.mrf.mxu0 }
 0x2bc   :  { %v605_v8 = vadd.f32 %v874_v50, %v604_v7  ;;  %1210 = vmatprep.mubr.f32.mxu1 %v657_v4  ;;  %v660_v11 = vmax.f32 %v610_v6, 0.0 }
 0x2bd   :  { %v1162_v9 = vpop.f32.mrf.mxu0  ;;  %1211 = vmatmul.mubr.f32.gmra.mxu1 %v658_v5 }
 0x2be   :  { %v659_v10 = vmax.f32 %v605_v8, 0.0  ;;  %v620_v12 = vadd.f32 %v1162_v9, %v874_v50 }
 0x2bf   :  { %v614_v13 = vpop.f32.mrf.mxu0 }
 0x2c0   :  { %v615_v14 = vadd.f32 %v874_v50, %v614_v13  ;;  %1213 = vmatprep.mubr.f32.mxu1 %v659_v10  ;;  %v662_v17 = vmax.f32 %v620_v12, 0.0 }
 0x2c1   :  { %v1165_v15 = vpop.f32.mrf.mxu0  ;;  %1214 = vmatmul.mubr.f32.gmra.mxu1 %v660_v11 }
 0x2c2   :  { %v661_v16 = vmax.f32 %v615_v14, 0.0  ;;  %v630_v18 = vadd.f32 %v1165_v15, %v874_v50 }
 0x2c3   :  { %v624_v19 = vpop.f32.mrf.mxu0 }
 0x2c4   :  { %v625_v20 = vadd.f32 %v874_v50, %v624_v19  ;;  %1216 = vmatprep.mubr.f32.mxu1 %v661_v16  ;;  %v664_v23 = vmax.f32 %v630_v18, 0.0 }
 0x2c5   :  { %v1168_v21 = vpop.f32.mrf.mxu0  ;;  %1217 = vmatmul.mubr.f32.gmra.mxu1 %v662_v17 }
 0x2c6   :  { %v663_v22 = vmax.f32 %v625_v20, 0.0  ;;  %v640_v24 = vadd.f32 %v1168_v21, %v874_v50 }
 0x2c7   :  { %v634_v25 = vpop.f32.mrf.mxu0 }
 0x2c8   :  { %v635_v26 = vadd.f32 %v874_v50, %v634_v25  ;;  %1219 = vmatprep.mubr.f32.mxu1 %v663_v22  ;;  %v666_v29 = vmax.f32 %v640_v24, 0.0 }
 0x2c9   :  { %v1171_v27 = vpop.f32.mrf.mxu0  ;;  %1220 = vmatmul.mubr.f32.gmra.mxu1 %v664_v23 }
 0x2ca   :  { %v665_v28 = vmax.f32 %v635_v26, 0.0  ;;  %v650_v30 = vadd.f32 %v1171_v27, %v874_v50 }
 0x2cb   :  { %v644_v31 = vpop.f32.mrf.mxu0 }
 0x2cc   :  { %v645_v32 = vadd.f32 %v874_v50, %v644_v31  ;;  %1222 = vmatprep.mubr.f32.mxu1 %v665_v28  ;;  %v668_v34 = vmax.f32 %v650_v30, 0.0 }
 0x2cd   :  { %1223 = vmatmul.mubr.f32.gmra.mxu1 %v666_v29 }
 0x2ce   :  { %v667_v33 = vmax.f32 %v645_v32, 0.0 }
 0x2d0   :  { %1225 = vmatprep.mubr.f32.mxu1 %v667_v33 }
 0x2d1   :  { %1226 = vmatmul.mubr.f32.gmra.mxu1 %v668_v34 }
 0x375   :  { %v1206_v36 = vpop.f32.mrf.mxu1 }
 0x376   :  { %v764_v37 = vadd.f32 %v1206_v36, %v875_v35 }
 0x377   :  { %v758_v38 = vpop.f32.mrf.mxu1 }
 0x378   :  { %838 = vst [vmem:[#allocation11 + $0x8] sm:$0xff] %v764_v37  ;;  %v759_v39 = vadd.f32 %v875_v35, %v758_v38 }
 0x379   :  { %v1209_v40 = vpop.f32.mrf.mxu1 }
 0x37a   :  { %837 = vst [vmem:[#allocation11] sm:$0xff] %v759_v39  ;;  %v774_v41 = vadd.f32 %v1209_v40, %v875_v35 }
 0x37b   :  { %v768_v42 = vpop.f32.mrf.mxu1 }
 0x37c   :  { %840 = vst [vmem:[#allocation11 + $0x18] sm:$0xff] %v774_v41  ;;  %v769_v43 = vadd.f32 %v875_v35, %v768_v42 }
 0x37d   :  { %v1212_v44 = vpop.f32.mrf.mxu1 }
 0x37e   :  { %839 = vst [vmem:[#allocation11 + $0x10] sm:$0xff] %v769_v43  ;;  %v784_v45 = vadd.f32 %v1212_v44, %v875_v35 }
 0x37f   :  { %v778_v46 = vpop.f32.mrf.mxu1 }
 0x380   :  { %842 = vst [vmem:[#allocation11 + $0x28] sm:$0xff] %v784_v45  ;;  %v779_v47 = vadd.f32 %v875_v35, %v778_v46 }
 0x381   :  { %v1215_v48 = vpop.f32.mrf.mxu1 }
 0x382   :  { %841 = vst [vmem:[#allocation11 + $0x20] sm:$0xff] %v779_v47  ;;  %v794_v49 = vadd.f32 %v1215_v48, %v875_v35 }
 0x383   :  { %v788_v50 = vpop.f32.mrf.mxu1 }
 0x384   :  { %844 = vst [vmem:[#allocation11 + $0x38] sm:$0xff] %v794_v49  ;;  %v789_v51 = vadd.f32 %v875_v35, %v788_v50 }
 0x385   :  { %v1218_v52 = vpop.f32.mrf.mxu1 }
 0x386   :  { %843 = vst [vmem:[#allocation11 + $0x30] sm:$0xff] %v789_v51  ;;  %v804_v53 = vadd.f32 %v1218_v52, %v875_v35 }
 0x387   :  { %v798_v54 = vpop.f32.mrf.mxu1 }
 0x388   :  { %846 = vst [vmem:[#allocation11 + $0x48] sm:$0xff] %v804_v53  ;;  %v799_v55 = vadd.f32 %v875_v35, %v798_v54 }
 0x389   :  { %v1221_v56 = vpop.f32.mrf.mxu1 }
 0x38a   :  { %845 = vst [vmem:[#allocation11 + $0x40] sm:$0xff] %v799_v55  ;;  %v814_v57 = vadd.f32 %v1221_v56, %v875_v35 }
 0x38b   :  { %v808_v58 = vpop.f32.mrf.mxu1 }
 0x38c   :  { %848 = vst [vmem:[#allocation11 + $0x58] sm:$0xff] %v814_v57  ;;  %v809_v59 = vadd.f32 %v875_v35, %v808_v58 }
 0x38d   :  { %v1224_v60 = vpop.f32.mrf.mxu1 }
 0x38e   :  { %847 = vst [vmem:[#allocation11 + $0x50] sm:$0xff] %v809_v59  ;;  %v824_v61 = vadd.f32 %v1224_v60, %v875_v35 }
 0x38f   :  { %v818_v62 = vpop.f32.mrf.mxu1 }
 0x390   :  { %850 = vst [vmem:[#allocation11 + $0x68] sm:$0xff] %v824_v61  ;;  %v819_v63 = vadd.f32 %v875_v35, %v818_v62 }
 0x391   :  { %v1227_v0 = vpop.f32.mrf.mxu1 }
 0x392   :  { %849 = vst [vmem:[#allocation11 + $0x60] sm:$0xff] %v819_v63  ;;  %v834_v1 = vadd.f32 %v1227_v0, %v875_v35 }
 0x393   :  { %v828_v2 = vpop.f32.mrf.mxu1 }
 0x394   :  { %852 = vst [vmem:[#allocation11 + $0x78] sm:$0xff] %v834_v1  ;;  %v829_v3 = vadd.f32 %v875_v35, %v828_v2 }
 0x396   :  { %851 = vst [vmem:[#allocation11 + $0x70] sm:$0xff] %v829_v3 }
 0x397   :  { %1347 = shalt.err (!%p1344_p1)
}
 0x398   :  { %864 = dma.vmem_to_hbm [thread:$0]  %s859_s17, 2048, %s1479_s9, [#allocation4], %s1366_s14, %s1366_s14, %s1367_s15  }
 0x399   :  { %1362 = dma.done.wait [#allocation4], 2048  }
 0x39a   :  { %1363 = vsyncadd [#allocation4], 4294965248 }
 0x39b   :  { %868 = vsyncpa [#allocation3], 1 }
 0x39c   :  { %869 = vsyncpa [#allocation6], 1 }
 0x39d   :  { %870 = vsyncpa [#allocation9], 1 }
 0x39e   :  { %871 = vsyncpa [#allocation4], 1 }

</bundles_post_ra>
